<compile_context>
chip_gen: v7x
topology: tpu7x:2x2x1
jax: 0.10.0
libtpu: 0.0.40
codegen_flags: <defaults>
</compile_context>

<pallas_src>
import jax
import jax.numpy as jnp
from jax.experimental import pallas as pl
from jax.experimental.pallas import tpu as pltpu

HIDDEN = 32
LANES = 128  # padded feature / action width (vreg lane count)


def pinet_kernel(x_ref, w1_ref, w2_ref, w3_ref, aux_ref, o_ref):
    # x_ref:  (TB, S)   f32   (unpadded state block)
    # w1_ref: (S, 128)  bf16  | w2_ref/w3_ref: (128, 128) bf16 (resident)
    # aux_ref:(8, 128)  f32   rows: b1, b2, b3+action_mask
    # o_ref:  (TB, 128) bf16  (lane-dense softmax probabilities)
    x = x_ref[...].astype(jnp.bfloat16)

    aux = aux_ref[...]
    b1 = aux[0:1, :]
    b2 = aux[1:2, :]
    b3m = aux[2:3, :]  # bias3 with -1e30 pre-added on padded action lanes

    # fc1 + relu (bf16 MXU operands, f32 accumulation; K = stateDims)
    h1 = jnp.dot(x, w1_ref[...], preferred_element_type=jnp.float32) + b1
    h1 = jnp.maximum(h1, 0.0).astype(jnp.bfloat16)

    # fc2 + relu
    h2 = jnp.dot(h1, w2_ref[...], preferred_element_type=jnp.float32) + b2
    h2 = jnp.maximum(h2, 0.0).astype(jnp.bfloat16)

    # fc3 (+ fused bias/mask row), then numerically-stable softmax in f32.
    logits = jnp.dot(h2, w3_ref[...], preferred_element_type=jnp.float32) + b3m
    m = jnp.max(logits, axis=-1, keepdims=True)
    e = jnp.exp(logits - m)  # padded lanes: exp(-huge) -> 0 exactly in f32
    denom = jnp.sum(e, axis=-1, keepdims=True)
    o_ref[...] = (e * pl.reciprocal(denom, approx=True)).astype(o_ref.dtype)


def pack_params(params, num_actions, w_dtype=jnp.bfloat16):
    """Pack (W1,b1,W2,b2,W3,b3) into resident kernel inputs.

    Weights are (in_features, out_features); biases are (out_features,).
    Returns (W1p, W2p, W3p, aux) where aux row2 = b3 + additive action mask.
    """
    w1, b1, w2, b2, w3, b3 = params
    state_dims = w1.shape[0]

    def pad_cols(w, rows):
        out = jnp.zeros((rows, LANES), jnp.float32)
        return out.at[: w.shape[0], : w.shape[1]].set(w)

    w1p = pad_cols(w1, state_dims).astype(w_dtype)
    w2p = pad_cols(w2, LANES).astype(w_dtype)
    w3p = pad_cols(w3, LANES).astype(w_dtype)

    mask = jnp.where(jnp.arange(LANES) < num_actions, 0.0, -1e30)
    aux = jnp.zeros((8, LANES), jnp.float32)
    aux = aux.at[0, : b1.shape[0]].set(b1)
    aux = aux.at[1, : b2.shape[0]].set(b2)
    aux = aux.at[2, :].set(mask)
    aux = aux.at[2, : b3.shape[0]].add(b3)
    return w1p, w2p, w3p, aux


def _choose_tile_b(b, max_tile_b):
    """Largest tile (multiple of 8, <= max_tile_b) that still leaves >= 2
    grid steps when the batch allows -> both TensorCores busy on v7x."""
    half = pl.cdiv(b, 2)
    return max(8, min(max_tile_b, pl.cdiv(half, 8) * 8))


def pinet_forward(x, packed, num_actions, *, max_tile_b=1024,
                  out_dtype=jnp.bfloat16):
    """x: (B, stateDims) or (stateDims,). Returns softmax probabilities of
    shape (B, numActions) (or (numActions,) for a single state), as f32."""
    w1p, w2p, w3p, aux = packed
    single = x.ndim == 1
    if single:
        x = x[None, :]
    b, state_dims = x.shape
    assert state_dims == w1p.shape[0]
    x = x.astype(jnp.float32)

    tile_b = _choose_tile_b(b, max_tile_b)
    bp = pl.cdiv(b, tile_b) * tile_b
    if bp != b:
        # Row-only pad (narrow f32 rows); no 128-lane padded input slab.
        x = jnp.zeros((bp, state_dims), x.dtype).at[:b].set(x)

    out = pl.pallas_call(
        pinet_kernel,
        out_shape=jax.ShapeDtypeStruct((bp, LANES), out_dtype),
        grid=(bp // tile_b,),
        in_specs=[
            pl.BlockSpec((tile_b, state_dims), lambda i: (i, 0)),  # states
            pl.BlockSpec((state_dims, LANES), lambda i: (0, 0)),   # W1 (resident)
            pl.BlockSpec((LANES, LANES), lambda i: (0, 0)),        # W2 (resident)
            pl.BlockSpec((LANES, LANES), lambda i: (0, 0)),        # W3 (resident)
            pl.BlockSpec((8, LANES), lambda i: (0, 0)),            # biases + mask
        ],
        out_specs=pl.BlockSpec((tile_b, LANES), lambda i: (i, 0)),
        compiler_params=pltpu.CompilerParams(
            dimension_semantics=("parallel",),
        ),
    )(x, w1p, w2p, w3p, aux)

    probs = out[:b, :num_actions].astype(jnp.float32)
    return probs[0] if single else probs


def init_params(key, state_dims, num_actions, hidden=HIDDEN):
    """nn.Linear-style init (uniform +/- 1/sqrt(fan_in)); weights stored as
    (in_features, out_features) for the x @ W layout; biases as (out,)."""
    ks = jax.random.split(key, 6)

    def lin(kw, kb, fan_in, fan_out):
        bound = 1.0 / jnp.sqrt(jnp.float32(fan_in))
        w = jax.random.uniform(kw, (fan_in, fan_out), jnp.float32, -bound, bound)
        bvec = jax.random.uniform(kb, (fan_out,), jnp.float32, -bound, bound)
        return w, bvec

    w1, b1 = lin(ks[0], ks[1], state_dims, hidden)
    w2, b2 = lin(ks[2], ks[3], hidden, hidden)
    w3, b3 = lin(ks[4], ks[5], hidden, num_actions)
    return (w1, b1, w2, b2, w3, b3)


def pinet_reference(x, params):
    """Pure-JAX reference mirroring the kernel's precisions:
    bf16 MXU operands (x, h1, h2, weights), f32 biases and softmax."""
    w1, b1, w2, b2, w3, b3 = params
    w1 = w1.astype(jnp.bfloat16).astype(jnp.float32)
    w2 = w2.astype(jnp.bfloat16).astype(jnp.float32)
    w3 = w3.astype(jnp.bfloat16).astype(jnp.float32)
    if x.ndim == 1:
        x = x[None, :]
    xb = x.astype(jnp.float32).astype(jnp.bfloat16).astype(jnp.float32)
    h1 = jnp.maximum(xb @ w1 + b1, 0.0).astype(jnp.bfloat16).astype(jnp.float32)
    h2 = jnp.maximum(h1 @ w2 + b2, 0.0).astype(jnp.bfloat16).astype(jnp.float32)
    logits = h2 @ w3 + b3
    return jax.nn.softmax(logits, axis=-1)


if __name__ == "__main__":
    state_dims = 8
    num_actions = 4
    batch = 256  # -> tile_b=128, 2 grid steps (both TCs on v7x)

    key = jax.random.PRNGKey(0)
    k_params, k_x = jax.random.split(key)
    params = init_params(k_params, state_dims, num_actions)
    packed = pack_params(params, num_actions)

    x_batch = jax.random.normal(k_x, (batch, state_dims), jnp.float32)

    # Batched path.
    out = pinet_forward(x_batch, packed, num_actions)
    out = jax.block_until_ready(out)
    ref = pinet_reference(x_batch, params)

    assert out.shape == (batch, num_actions)
    # bf16 output + approx reciprocal -> sums to 1 within ~1e-2.
    assert jnp.allclose(jnp.sum(out, axis=-1), 1.0, atol=2e-2)
    assert jnp.allclose(out, ref, atol=1e-2, rtol=5e-2)

    # Single-state path (original PyTorch semantics: 1-D state -> 1-D probs).
    out1 = pinet_forward(x_batch[0], packed, num_actions)
    out1 = jax.block_until_ready(out1)
    assert out1.shape == (num_actions,)
    assert jnp.allclose(out1, ref[0], atol=1e-2, rtol=5e-2)

    print("KERNEL_OK")
</pallas_src>

<mosaic_0001>
module attributes {stable_mosaic.version = 11 : i64} {
  func.func @pinet_kernel(%arg0: i32, %arg1: memref<128x8xf32, #tpu.memory_space<vmem>>, %arg2: memref<8x128xbf16, #tpu.memory_space<vmem>>, %arg3: memref<128x128xbf16, #tpu.memory_space<vmem>>, %arg4: memref<128x128xbf16, #tpu.memory_space<vmem>>, %arg5: memref<8x128xf32, #tpu.memory_space<vmem>>, %arg6: memref<128x128xbf16, #tpu.memory_space<vmem>>) attributes {dimension_semantics = [#tpu.dimension_semantics<parallel>], iteration_bounds = array<i64: 2>, scalar_prefetch = 0 : i64, scratch_operands = 0 : i64, tpu.core_type = #tpu.core_type<tc>, window_params = [{transform_indices = @transform_0, window_bounds = array<i64: 128, 8>}, {pipeline_mode = #tpu.pipeline_mode<synchronous>, transform_indices = @transform_1, window_bounds = array<i64: 8, 128>}, {pipeline_mode = #tpu.pipeline_mode<synchronous>, transform_indices = @transform_2, window_bounds = array<i64: 128, 128>}, {pipeline_mode = #tpu.pipeline_mode<synchronous>, transform_indices = @transform_3, window_bounds = array<i64: 128, 128>}, {pipeline_mode = #tpu.pipeline_mode<synchronous>, transform_indices = @transform_4, window_bounds = array<i64: 8, 128>}, {transform_indices = @transform_5, window_bounds = array<i64: 128, 128>}]} {
    %c0 = arith.constant 0 : index
    %c0_0 = arith.constant 0 : index
    %0 = vector.load %arg1[%c0, %c0_0] : memref<128x8xf32, #tpu.memory_space<vmem>>, vector<128x8xf32>
    %1 = arith.truncf %0 : vector<128x8xf32> to vector<128x8xbf16>
    %c0_1 = arith.constant 0 : index
    %c0_2 = arith.constant 0 : index
    %2 = vector.load %arg5[%c0_1, %c0_2] : memref<8x128xf32, #tpu.memory_space<vmem>>, vector<8x128xf32>
    %3 = vector.extract_strided_slice %2 {offsets = [0, 0], sizes = [1, 128], strides = [1, 1]} : vector<8x128xf32> to vector<1x128xf32>
    %4 = vector.extract_strided_slice %2 {offsets = [1, 0], sizes = [1, 128], strides = [1, 1]} : vector<8x128xf32> to vector<1x128xf32>
    %5 = vector.extract_strided_slice %2 {offsets = [2, 0], sizes = [1, 128], strides = [1, 1]} : vector<8x128xf32> to vector<1x128xf32>
    %c0_3 = arith.constant 0 : index
    %c0_4 = arith.constant 0 : index
    %6 = vector.load %arg2[%c0_3, %c0_4] : memref<8x128xbf16, #tpu.memory_space<vmem>>, vector<8x128xbf16>
    %cst = arith.constant dense<0.000000e+00> : vector<128x128xf32>
    %7 = tpu.matmul %1, %6, %cst {dimension_numbers = #tpu.dot_dimension_numbers<[1], [0], [0], [1], [0, 0, 1, 1], [], []>} : vector<128x8xbf16>, vector<8x128xbf16>, vector<128x128xf32> -> vector<128x128xf32>
    %8 = vector.broadcast %3 : vector<1x128xf32> to vector<128x128xf32>
    %9 = arith.addf %7, %8 : vector<128x128xf32>
    %cst_5 = arith.constant 0.000000e+00 : f32
    %10 = vector.broadcast %cst_5 : f32 to vector<128x128xf32>
    %11 = arith.maximumf %9, %10 : vector<128x128xf32>
    %12 = arith.truncf %11 : vector<128x128xf32> to vector<128x128xbf16>
    %c0_6 = arith.constant 0 : index
    %c0_7 = arith.constant 0 : index
    %13 = vector.load %arg3[%c0_6, %c0_7] : memref<128x128xbf16, #tpu.memory_space<vmem>>, vector<128x128xbf16>
    %cst_8 = arith.constant dense<0.000000e+00> : vector<128x128xf32>
    %14 = tpu.matmul %12, %13, %cst_8 {dimension_numbers = #tpu.dot_dimension_numbers<[1], [0], [0], [1], [0, 0, 1, 1], [], []>} : vector<128x128xbf16>, vector<128x128xbf16>, vector<128x128xf32> -> vector<128x128xf32>
    %15 = vector.broadcast %4 : vector<1x128xf32> to vector<128x128xf32>
    %16 = arith.addf %14, %15 : vector<128x128xf32>
    %cst_9 = arith.constant 0.000000e+00 : f32
    %17 = vector.broadcast %cst_9 : f32 to vector<128x128xf32>
    %18 = arith.maximumf %16, %17 : vector<128x128xf32>
    %19 = arith.truncf %18 : vector<128x128xf32> to vector<128x128xbf16>
    %c0_10 = arith.constant 0 : index
    %c0_11 = arith.constant 0 : index
    %20 = vector.load %arg4[%c0_10, %c0_11] : memref<128x128xbf16, #tpu.memory_space<vmem>>, vector<128x128xbf16>
    %cst_12 = arith.constant dense<0.000000e+00> : vector<128x128xf32>
    %21 = tpu.matmul %19, %20, %cst_12 {dimension_numbers = #tpu.dot_dimension_numbers<[1], [0], [0], [1], [0, 0, 1, 1], [], []>} : vector<128x128xbf16>, vector<128x128xbf16>, vector<128x128xf32> -> vector<128x128xf32>
    %22 = vector.broadcast %5 : vector<1x128xf32> to vector<128x128xf32>
    %23 = arith.addf %21, %22 : vector<128x128xf32>
    %cst_13 = arith.constant dense<0xFF800000> : vector<128xf32>
    %24 = vector.multi_reduction <maximumf>, %23, %cst_13 [1] : vector<128x128xf32> to vector<128xf32>
    %25 = vector.shape_cast %24 : vector<128xf32> to vector<128x1xf32>
    %26 = vector.broadcast %25 : vector<128x1xf32> to vector<128x128xf32>
    %27 = arith.subf %23, %26 : vector<128x128xf32>
    %28 = math.exp %27 : vector<128x128xf32>
    %cst_14 = arith.constant dense<0.000000e+00> : vector<128xf32>
    %29 = vector.multi_reduction <add>, %28, %cst_14 [1] : vector<128x128xf32> to vector<128xf32>
    %30 = vector.shape_cast %29 : vector<128xf32> to vector<128x1xf32>
    %31 = tpu.reciprocal %30 {approx = true} : vector<128x1xf32> -> vector<128x1xf32>
    %32 = vector.broadcast %31 : vector<128x1xf32> to vector<128x128xf32>
    %33 = arith.mulf %28, %32 : vector<128x128xf32>
    %34 = arith.truncf %33 : vector<128x128xf32> to vector<128x128xbf16>
    %c0_15 = arith.constant 0 : index
    %c0_16 = arith.constant 0 : index
    %35 = vector.load %arg6[%c0_15, %c0_16] : memref<128x128xbf16, #tpu.memory_space<vmem>>, vector<128x128xbf16>
    tpu.vector_store %arg6[%c0_15, %c0_16], %34 {strides = array<i32>} : memref<128x128xbf16, #tpu.memory_space<vmem>>, vector<128x128xbf16>,
    return
  }
  func.func @transform_0(%arg0: i32) -> (i32, i32) {
    %c0_i32 = arith.constant 0 : i32
    %c0_i32_0 = arith.constant 0 : i32
    return %arg0, %c0_i32 : i32, i32
  }
  func.func @transform_1(%arg0: i32) -> (i32, i32) {
    %c0_i32 = arith.constant 0 : i32
    %c0_i32_0 = arith.constant 0 : i32
    %c0_i32_1 = arith.constant 0 : i32
    return %c0_i32, %c0_i32_0 : i32, i32
  }
  func.func @transform_2(%arg0: i32) -> (i32, i32) {
    %c0_i32 = arith.constant 0 : i32
    %c0_i32_0 = arith.constant 0 : i32
    %c0_i32_1 = arith.constant 0 : i32
    return %c0_i32, %c0_i32_0 : i32, i32
  }
  func.func @transform_3(%arg0: i32) -> (i32, i32) {
    %c0_i32 = arith.constant 0 : i32
    %c0_i32_0 = arith.constant 0 : i32
    %c0_i32_1 = arith.constant 0 : i32
    return %c0_i32, %c0_i32_0 : i32, i32
  }
  func.func @transform_4(%arg0: i32) -> (i32, i32) {
    %c0_i32 = arith.constant 0 : i32
    %c0_i32_0 = arith.constant 0 : i32
    %c0_i32_1 = arith.constant 0 : i32
    return %c0_i32, %c0_i32_0 : i32, i32
  }
  func.func @transform_5(%arg0: i32) -> (i32, i32) {
    %c0_i32 = arith.constant 0 : i32
    %c0_i32_0 = arith.constant 0 : i32
    return %arg0, %c0_i32 : i32, i32
  }
}

</mosaic_0001>

<bundles_post_ra>
// kernel: tpu_custom_call.1
= control target key start
LH: loop header
LB: loop body
LE: loop exit
PB: predicated region body
PF: predicated region fallthrough
CT: control target
= control target key end

     0   :  { %10 = vsyncpa [#allocation3], 0  ;;  %s1822_s0 = inlined_call_operand.vmem [shape: f32[256,8], index: 0, kind: input, shape index: {}]   ;;  %s1823_s1 = inlined_call_operand.vmem [shape: bf16[8,128], index: 1, kind: input, shape index: {}]   ;;  %s1824_s2 = inlined_call_operand.vmem [shape: bf16[128,128], index: 2, kind: input, shape index: {}]   ;;  %s1825_s3 = inlined_call_operand.vmem [shape: bf16[128,128], index: 3, kind: input, shape index: {}]   ;;  %s1826_s4 = inlined_call_operand.vmem [shape: f32[8,128], index: 4, kind: input, shape index: {}]   ;;  %s1827_s5 = inlined_call_operand.hbm [shape: bf16[256,128], index: 5, kind: output, shape index: {}]  }
   0x1   :  { %12 = vsyncpa [#allocation3 + $0x1], 0  ;;  %s1519_s18 = smov 0   ;;  %s1521_s19 = smov 0  }
   0x2   :  { %s1523_s20 = smov 0   ;;  %s1525_s21 = smov 0  }
   0x3 LB: > { %s1540_s22 = sadd.s32 4294967295, %s1484_s21   ;;  %s1061_s23 = sadd.s32 4294967294, %s1484_s21   ;;  %s1484_s21 = sphi %s1525_s21, %s1833_s21   ;;  %s1480_s20 = sphi %s1523_s20, %s1832_s20   ;;  %s1476_s19 = sphi %s1521_s19, %s1831_s19   ;;  %s1472_s18 = sphi %s1519_s18, %s1830_s18  }
   0x4   : > { %s1544_s24 = sadd.s32 1, %s1484_s21   ;;  %s135_s25 = sadd.s32 1, %s1480_s20 }
   0x5   : > { %s132_s26 = ssub.s32 %s1484_s21, %s1544_s24  ;;  %p145_p0 = scmp.ne.s32.totalorder %s1480_s20, %s1476_s19 }
   0x6   : > { %p133_p1 = scmp.eq.s32.totalorder %s132_s26, 0  ;;  %p146_p2 = scmp.eq.s32.totalorder %s1540_s22, 1 }
   0x7   : > { %p151_p3 = scmp.ne.s32.totalorder %s1476_s19, %s1472_s18  ;;  %p152_p4 = scmp.eq.s32.totalorder %s1061_s23, 1 }
   0x8   : > { %s1555_s27 = scalar_select %p133_p1, %s1480_s20, %s135_s25  }
   0x9   : > { %p1557_p5 = por %p146_p2, %p145_p0  ;;  %p1561_p6 = por %p152_p4, %p151_p3 }
   0xa   : > { %p1064_p7 = scmp.ge.s32.totalorder %s1484_s21, 1  ;;  %p191_p8 = scmp.lt.s32.totalorder %s1484_s21, 3 }
   0xc   : > { %p192_p9 = pnand %p1064_p7, %p191_p8 }
   0xd   : > { %v252_v0 = vld [vmem:[%s1823_s1] sm:$0xf] (!%p192_p9)  ;;  %vm282_vm0 = vcmask (!%p192_p9), 1043456   ;;  %s1066_s7 = sshll.u32 (!%p192_p9), %s1540_s22, 4  ;;  %v1343_v3 = vld [vmem:[%s1824_s2 + $0x8] sm:$0xff] (!%p192_p9)   ;;  %v1344_v4 = vld [vmem:[%s1824_s2 + $0x10] sm:$0xff] (!%p192_p9)   ;;  %v253_v40 = vlaneseq (!%p192_p9) }
   0xe   : > { %195 = sbr.rel (%p192_p9) target bundleno = 1047 (0x417), region = 40  ;;  %v1342_v1 = vld [vmem:[%s1824_s2] sm:$0xff] (!%p192_p9)   ;;  %1300 = vmatprep.subr.msk.bf16.mxu0 (!%p192_p9), %vm282_vm0, %v252_v0  ;;  %v284_v2 = vsel (!%p192_p9), %vm282_vm0, %v252_v0, 0  ;;  %p220_p10 = scmp.lt.s32.totalorder (!%p192_p9), %s1066_s7, 31  ;;  %v1345_v5 = vld [vmem:[%s1824_s2 + $0x18] sm:$0xff] (!%p192_p9)   ;;  %vm257_vm1 = vcmask (!%p192_p9), 64512  }
   0xf   : > { %1219 = vmatpush3.bf16.msra.mxu0 (!%p192_p9), %v284_v2  ;;  %1236 = vmatprep.subr.bf16.mxu1 (!%p192_p9), %v1342_v1  ;;  %v1346_v17 = vld [vmem:[%s1824_s2 + $0x20] sm:$0xff] (!%p192_p9)   ;;  %v1347_v20 = vld [vmem:[%s1824_s2 + $0x28] sm:$0xff] (!%p192_p9)   ;;  %v1348_v32 = vld [vmem:[%s1824_s2 + $0x30] sm:$0xff] (!%p192_p9)   ;;  %v1642_v41 = vshrl.u32 (!%p192_p9), %v253_v40, 7 }
  0x10   : > { %1237 = vmatpush3.bf16.msra.mxu1 (!%p192_p9), %v1342_v1  ;;  %v1349_v33 = vld [vmem:[%s1824_s2 + $0x38] sm:$0xff] (!%p192_p9)   ;;  %v1350_v34 = vld [vmem:[%s1825_s3] sm:$0xff] (!%p192_p9)   ;;  %v1351_v35 = vld [vmem:[%s1825_s3 + $0x8] sm:$0xff] (!%p192_p9)  }
  0x11   : > { %1238 = vmatprep.subr.bf16.mxu1 (!%p192_p9), %v1343_v3  ;;  %1268 = vmatprep.subr.bf16.mxu0 (!%p192_p9), %v1350_v34  ;;  %v1352_v36 = vld [vmem:[%s1825_s3 + $0x10] sm:$0xff] (!%p192_p9)   ;;  %v1353_v37 = vld [vmem:[%s1825_s3 + $0x18] sm:$0xff] (!%p192_p9)   ;;  %v1354_v38 = vld [vmem:[%s1825_s3 + $0x20] sm:$0xff] (!%p192_p9)   ;;  %v255_v42 = vsub.s32 (!%p192_p9), 0, %v1642_v41 }
  0x12   : > { %v1355_v39 = vld [vmem:[%s1825_s3 + $0x28] sm:$0xff] (!%p192_p9)   ;;  %v1648_v43 = vld [vmem:[%s1826_s4] sm:$0xff] (!%p192_p9) }
  0x13   : > { %v256_v44 = vrot.slane (!%p192_p9), %v1648_v43, %v255_v42 }
  0x14   : > { %1239 = vmatpush3.bf16.msra.mxu1 (!%p192_p9), %v1343_v3 }
  0x15   : > { %s1835_s7 = smov (!%p220_p10, %s1066_s7), 31  ;;  %1240 = vmatprep.subr.bf16.mxu1 %v1344_v4 }
  0x16   : > { %s1067_s14 = sshll.u32 %s1835_s7, 3  ;;  %s1486_s7 = smov [#allocation2]  }
  0x17   : > { %s1583_s17 = scalar_lea.vmem %s1822_s0, %s1067_s14  ;;  %s216_s14 = sand.u32 1, %s1476_s19  }
  0x18   : > { %v227_v6 = vld [vmem:[%s1583_s17] sm:$0xff]  ;;  %v228_v7 = vld [vmem:[%s1583_s17 + $0x8] sm:$0xff]  ;;  %v229_v8 = vld [vmem:[%s1583_s17 + $0x10] sm:$0xff]  ;;  %1241 = vmatpush3.bf16.msra.mxu1 %v1344_v4  ;;  %s1065_s15 = sshll.u32 %s216_s14, 6  ;;  %s1426_s8 = sshll.u32 %s1486_s7, 4  ;;  %s1427_s8 = int_to_ptr.vmem [resolvable:$false] %s1426_s8 }
  0x19   : > { %v243_v9 = vpack.c.bf16 %v228_v7, %v227_v6  ;;  %v230_v10 = vld [vmem:[%s1583_s17 + $0x18] sm:$0xff]  ;;  %v231_v11 = vld [vmem:[%s1583_s17 + $0x20] sm:$0xff]  ;;  %v232_v12 = vld [vmem:[%s1583_s17 + $0x28] sm:$0xff]  ;;  %1242 = vmatprep.subr.bf16.mxu1 %v1345_v5  ;;  %s1746_s16 = scalar_lea.vmem [#allocation2], %s1065_s15  ;;  %s1428_s9 = scalar_lea.vmem %s1427_s8, 2048 }
  0x1a   : > { %v244_v13 = vpack.c.bf16 %v230_v10, %v229_v8  ;;  %v245_v14 = vpack.c.bf16 %v232_v12, %v231_v11  ;;  %v233_v15 = vld [vmem:[%s1583_s17 + $0x30] sm:$0xff]  ;;  %v234_v16 = vld [vmem:[%s1583_s17 + $0x38] sm:$0xff]  ;;  %v235_v18 = vld [vmem:[%s1583_s17 + $0x40] sm:$0xff]  ;;  %s999_s23 = sshll.u32 %s1746_s16, 4  ;;  %s1776_s23 = int_to_ptr.vmem [resolvable:$true] %s999_s23 }
  0x1b   : > { %1220 = vmatprep.mubr.msk.bf16.mxu0 %vm257_vm1, %v243_v9  ;;  %v236_v19 = vld [vmem:[%s1583_s17 + $0x48] sm:$0xff]  ;;  %v246_v21 = vpack.c.bf16 %v234_v16, %v233_v15  ;;  %v237_v23 = vld [vmem:[%s1583_s17 + $0x50] sm:$0xff]  ;;  %v238_v24 = vld [vmem:[%s1583_s17 + $0x58] sm:$0xff]  ;;  %s1422_s6 = scalar_lea.vmem %s1776_s23, 1024  ;;  %p1429_p0 = scmp.lt.s32.totalorder %s1776_s23, %s1427_s8 }
  0x1c   : > { %1221 = vmatmul.mubr.msk.bf16.vlgmr.msra.gmra.mrb[0].mxu0 %vm257_vm1, %v244_v13  ;;  %1243 = vmatpush3.bf16.msra.mxu1 %v1345_v5  ;;  %v247_v22 = vpack.c.bf16 %v236_v19, %v235_v18  ;;  %v239_v25 = vld [vmem:[%s1583_s17 + $0x60] sm:$0xff]  ;;  %v240_v26 = vld [vmem:[%s1583_s17 + $0x68] sm:$0xff]  ;;  %v248_v27 = vpack.c.bf16 %v238_v24, %v237_v23  ;;  %v241_v29 = vld [vmem:[%s1583_s17 + $0x70] sm:$0xff]  ;;  %p1423_p11 = scmp.ne.s32.totalorder %s1776_s23, %s1422_s6  ;;  %p1430_p1 = scmp.lt.s32.totalorder %s1428_s9, %s1422_s6 }
  0x1d   : > { %1224 = vmatprep.mubr.msk.bf16.mxu0 %vm257_vm1, %v245_v14  ;;  %1244 = vmatprep.subr.bf16.mxu1 %v1346_v17  ;;  %v249_v28 = vpack.c.bf16 %v240_v26, %v239_v25  ;;  %v242_v30 = vld [vmem:[%s1583_s17 + $0x78] sm:$0xff]  ;;  %s1129_s17 = sshll.u32 %s1540_s22, 10  ;;  %s1781_s22 = scalar_lea.sflag [#allocation3], %s216_s14 }
  0x1e   : > { %v250_v31 = vpack.c.bf16 %v242_v30, %v241_v29  ;;  %1269 = vmatpush3.bf16.msra.mxu0 %v1350_v34  ;;  %s1774_s30 = scalar_lea.hbm %s1827_s5, %s1129_s17  ;;  %p1424_p12 = pnand %p1423_p11, %p1557_p5 }
  0x1f   : > { %1270 = vmatprep.subr.bf16.mxu0 %v1351_v35  ;;  %p1431_p2 = por %p1430_p1, %p1429_p0 }
  0x20   : > { %1245 = vmatpush3.bf16.msra.mxu1 %v1346_v17  ;;  %p1425_p13 = pneg %p1424_p12 }
  0x21   : > { %1246 = vmatprep.subr.bf16.mxu1 %v1347_v20 }
  0x22   : > { %1271 = vmatpush3.bf16.msra.mxu0 %v1351_v35  ;;  %p1432_p3 = pnand %p1431_p2, %p1425_p13 }
  0x23   : > { %1272 = vmatprep.subr.bf16.mxu0 %v1352_v36 }
  0x24   : > { %1225 = vmatmul.mubr.msk.bf16.gmra.mrb[4].mxu0 %vm257_vm1, %v246_v21  ;;  %1247 = vmatpush3.bf16.msra.mxu1 %v1347_v20 }
  0x25   : > { %1228 = vmatprep.mubr.msk.bf16.mxu0 %vm257_vm1, %v247_v22  ;;  %1248 = vmatprep.subr.bf16.mxu1 %v1348_v32 }
  0x26   : > { %1273 = vmatpush3.bf16.msra.mxu0 %v1352_v36 }
  0x27   : > { %1274 = vmatprep.subr.bf16.mxu0 %v1353_v37 }
  0x28   : > { %1249 = vmatpush3.bf16.msra.mxu1 %v1348_v32 }
  0x29   : > { %1250 = vmatprep.subr.bf16.mxu1 %v1349_v33 }
  0x2a   : > { %1275 = vmatpush3.bf16.msra.mxu0 %v1353_v37  ;;  %v1356_v37 = vld [vmem:[%s1825_s3 + $0x30] sm:$0xff]  }
  0x2b   : > { %1276 = vmatprep.subr.bf16.mxu0 %v1354_v38 }
  0x2c   : > { %1229 = vmatmul.mubr.msk.bf16.gmra.mrb[8].mxu0 %vm257_vm1, %v248_v27  ;;  %1251 = vmatpush3.bf16.msra.mxu1 %v1349_v33 }
  0x2d   : > { %1232 = vmatprep.mubr.msk.bf16.mxu0 %vm257_vm1, %v249_v28 }
  0x2e   : > { %1277 = vmatpush3.bf16.msra.mxu0 %v1354_v38  ;;  %v1357_v38 = vld [vmem:[%s1825_s3 + $0x38] sm:$0xff]  }
  0x2f   : > { %1278 = vmatprep.subr.bf16.mxu0 %v1355_v39 }
  0x32   : > { %1279 = vmatpush3.bf16.msra.mxu0 %v1355_v39  ;;  %v425_v39 = vsub.s32 1, %v1642_v41 }
  0x33   : > { %1280 = vmatprep.subr.bf16.mxu0 %v1356_v37 }
  0x34   : > { %1233 = vmatmul.mubr.msk.bf16.gmra.mrb[12].mxu0 %vm257_vm1, %v250_v31  ;;  %v426_v40 = vrot.slane %v1648_v43, %v425_v39 }
  0x36   : > { %1281 = vmatpush3.bf16.msra.mxu0 %v1356_v37 }
  0x37   : > { %1282 = vmatprep.subr.bf16.mxu0 %v1357_v38 }
  0x3a   : > { %1283 = vmatpush3.bf16.msra.mxu0 %v1357_v38 }
  0xef   : > { %v1222_v45 = vpop.f32.mrb[0].mxu0 }
  0xf0   : > { %v329_v46 = vadd.f32 %v1222_v45, %v256_v44  ;;  %v320_v47 = vpop.f32.mrb[1].mxu0 }
  0xf1   : > { %v321_v48 = vadd.f32 %v320_v47, %v256_v44  ;;  %v1223_v49 = vpop.f32.mrb[2].mxu0 }
  0xf2   : > { %v332_v50 = vadd.f32 %v1223_v49, %v256_v44  ;;  %v323_v51 = vpop.f32.mrb[3].mxu0  ;;  %v385_v53 = vmax.f32 %v329_v46, 0.0 }
  0xf3   : > { %v324_v52 = vadd.f32 %v323_v51, %v256_v44  ;;  %v383_v55 = vmax.f32 %v321_v48, 0.0 }
  0xf4   : > { %v386_v54 = vmax.f32 %v332_v50, 0.0 }
  0xf5   : > { %v384_v56 = vmax.f32 %v324_v52, 0.0 }
  0xf6   : > { %v400_v57 = vpack.c.bf16 %v386_v54, %v385_v53 }
  0xf7   : > { %v1226_v58 = vpop.f32.mrb[4].mxu0  ;;  %v399_v59 = vpack.c.bf16 %v384_v56, %v383_v55 }
  0xf8   : > { %v345_v60 = vadd.f32 %v1226_v58, %v256_v44  ;;  %v336_v61 = vpop.f32.mrb[5].mxu0 }
  0xf9   : > { %v337_v62 = vadd.f32 %v336_v61, %v256_v44  ;;  %v1227_v63 = vpop.f32.mrb[6].mxu0  ;;  %1252 = vmatprep.mubr.bf16.mxu1 %v399_v59 }
  0xfa   : > { %v389_v0 = vmax.f32 %v345_v60, 0.0  ;;  %v348_v1 = vadd.f32 %v1227_v63, %v256_v44  ;;  %v339_v2 = vpop.f32.mrb[7].mxu0  ;;  %1253 = vmatmul.mubr.bf16.vlgmr.msra.gmra.mrb[0].mxu1 %v400_v57 }
  0xfb   : > { %v340_v3 = vadd.f32 %v339_v2, %v256_v44  ;;  %v387_v5 = vmax.f32 %v337_v62, 0.0 }
  0xfc   : > { %v390_v4 = vmax.f32 %v348_v1, 0.0 }
  0xfd   : > { %v388_v6 = vmax.f32 %v340_v3, 0.0 }
  0xfe   : > { %v402_v7 = vpack.c.bf16 %v390_v4, %v389_v0 }
  0xff   : > { %v401_v8 = vpack.c.bf16 %v388_v6, %v387_v5  ;;  %v1230_v9 = vpop.f32.mrb[8].mxu0 }
 0x100   : > { %v361_v10 = vadd.f32 %v1230_v9, %v256_v44  ;;  %v352_v11 = vpop.f32.mrb[9].mxu0 }
 0x101   : > { %v353_v12 = vadd.f32 %v352_v11, %v256_v44  ;;  %v1231_v13 = vpop.f32.mrb[10].mxu0  ;;  %1256 = vmatprep.mubr.bf16.mxu1 %v401_v8 }
 0x102   : > { %v393_v14 = vmax.f32 %v361_v10, 0.0  ;;  %v364_v15 = vadd.f32 %v1231_v13, %v256_v44  ;;  %v355_v16 = vpop.f32.mrb[11].mxu0  ;;  %1257 = vmatmul.mubr.bf16.gmra.mrb[4].mxu1 %v402_v7 }
 0x103   : > { %v356_v17 = vadd.f32 %v355_v16, %v256_v44  ;;  %v391_v19 = vmax.f32 %v353_v12, 0.0 }
 0x104   : > { %v394_v18 = vmax.f32 %v364_v15, 0.0 }
 0x105   : > { %v392_v20 = vmax.f32 %v356_v17, 0.0 }
 0x106   : > { %v404_v21 = vpack.c.bf16 %v394_v18, %v393_v14 }
 0x107   : > { %v403_v22 = vpack.c.bf16 %v392_v20, %v391_v19  ;;  %v1234_v23 = vpop.f32.mrb[12].mxu0 }
 0x108   : > { %v377_v24 = vadd.f32 %v1234_v23, %v256_v44  ;;  %v368_v25 = vpop.f32.mrb[13].mxu0 }
 0x109   : > { %v369_v26 = vadd.f32 %v368_v25, %v256_v44  ;;  %v1235_v27 = vpop.f32.mrb[14].mxu0  ;;  %1260 = vmatprep.mubr.bf16.mxu1 %v403_v22 }
 0x10a   : > { %v397_v28 = vmax.f32 %v377_v24, 0.0  ;;  %v380_v29 = vadd.f32 %v1235_v27, %v256_v44  ;;  %v371_v30 = vpop.f32.mrb[15].mxu0  ;;  %1261 = vmatmul.mubr.bf16.gmra.mrb[8].mxu1 %v404_v21 }
 0x10b   : > { %v372_v31 = vadd.f32 %v371_v30, %v256_v44  ;;  %v395_v33 = vmax.f32 %v369_v26, 0.0 }
 0x10c   : > { %v398_v32 = vmax.f32 %v380_v29, 0.0 }
 0x10d   : > { %v396_v34 = vmax.f32 %v372_v31, 0.0 }
 0x10e   : > { %v406_v35 = vpack.c.bf16 %v398_v32, %v397_v28 }
 0x10f   : > { %v405_v36 = vpack.c.bf16 %v396_v34, %v395_v33 }
 0x111   : > { %1264 = vmatprep.mubr.bf16.mxu1 %v405_v36 }
 0x112   : > { %1265 = vmatmul.mubr.bf16.gmra.mrb[12].mxu1 %v406_v35  ;;  %v614_v35 = vsub.s32 2, %v1642_v41 }
 0x114   : > { %v615_v36 = vrot.slane %v1648_v43, %v614_v35 }
 0x1cd   : > { %v1254_v42 = vpop.f32.mrb[0].mxu1 }
 0x1ce   : > { %v518_v44 = vadd.f32 %v1254_v42, %v426_v40  ;;  %v509_v45 = vpop.f32.mrb[1].mxu1 }
 0x1cf   : > { %v510_v46 = vadd.f32 %v509_v45, %v426_v40  ;;  %v1255_v47 = vpop.f32.mrb[2].mxu1 }
 0x1d0   : > { %v521_v48 = vadd.f32 %v1255_v47, %v426_v40  ;;  %v512_v49 = vpop.f32.mrb[3].mxu1  ;;  %v574_v51 = vmax.f32 %v518_v44, 0.0 }
 0x1d1   : > { %v513_v50 = vadd.f32 %v512_v49, %v426_v40  ;;  %v572_v53 = vmax.f32 %v510_v46, 0.0 }
 0x1d2   : > { %v575_v52 = vmax.f32 %v521_v48, 0.0 }
 0x1d3   : > { %v573_v54 = vmax.f32 %v513_v50, 0.0 }
 0x1d4   : > { %v589_v55 = vpack.c.bf16 %v575_v52, %v574_v51 }
 0x1d5   : > { %v588_v56 = vpack.c.bf16 %v573_v54, %v572_v53  ;;  %v1258_v57 = vpop.f32.mrb[4].mxu1 }
 0x1d6   : > { %v534_v58 = vadd.f32 %v1258_v57, %v426_v40  ;;  %v525_v59 = vpop.f32.mrb[5].mxu1 }
 0x1d7   : > { %v526_v60 = vadd.f32 %v525_v59, %v426_v40  ;;  %v1259_v61 = vpop.f32.mrb[6].mxu1  ;;  %1284 = vmatprep.mubr.bf16.mxu0 %v588_v56 }
 0x1d8   : > { %v537_v62 = vadd.f32 %v1259_v61, %v426_v40  ;;  %v528_v63 = vpop.f32.mrb[7].mxu1  ;;  %1285 = vmatmul.mubr.bf16.vlgmr.msra.gmra.mrb[16].mxu0 %v589_v55  ;;  %v578_v1 = vmax.f32 %v534_v58, 0.0 }
 0x1d9   : > { %v529_v0 = vadd.f32 %v528_v63, %v426_v40  ;;  %v576_v3 = vmax.f32 %v526_v60, 0.0 }
 0x1da   : > { %v579_v2 = vmax.f32 %v537_v62, 0.0 }
 0x1db   : > { %v577_v4 = vmax.f32 %v529_v0, 0.0 }
 0x1dc   : > { %v591_v5 = vpack.c.bf16 %v579_v2, %v578_v1 }
 0x1dd   : > { %v590_v6 = vpack.c.bf16 %v577_v4, %v576_v3  ;;  %v1262_v7 = vpop.f32.mrb[8].mxu1 }
 0x1de   : > { %v550_v8 = vadd.f32 %v1262_v7, %v426_v40  ;;  %v541_v9 = vpop.f32.mrb[9].mxu1 }
 0x1df   : > { %v542_v10 = vadd.f32 %v541_v9, %v426_v40  ;;  %v1263_v11 = vpop.f32.mrb[10].mxu1  ;;  %1288 = vmatprep.mubr.bf16.mxu0 %v590_v6 }
 0x1e0   : > { %v553_v12 = vadd.f32 %v1263_v11, %v426_v40  ;;  %v544_v13 = vpop.f32.mrb[11].mxu1  ;;  %1289 = vmatmul.mubr.bf16.gmra.mrb[20].mxu0 %v591_v5  ;;  %v582_v15 = vmax.f32 %v550_v8, 0.0 }
 0x1e1   : > { %v545_v14 = vadd.f32 %v544_v13, %v426_v40  ;;  %v580_v17 = vmax.f32 %v542_v10, 0.0 }
 0x1e2   : > { %v583_v16 = vmax.f32 %v553_v12, 0.0 }
 0x1e3   : > { %v581_v18 = vmax.f32 %v545_v14, 0.0 }
 0x1e4   : > { %v593_v19 = vpack.c.bf16 %v583_v16, %v582_v15 }
 0x1e5   : > { %v592_v20 = vpack.c.bf16 %v581_v18, %v580_v17  ;;  %v1266_v21 = vpop.f32.mrb[12].mxu1 }
 0x1e6   : > { %v566_v22 = vadd.f32 %v1266_v21, %v426_v40  ;;  %v557_v23 = vpop.f32.mrb[13].mxu1 }
 0x1e7   : > { %v558_v24 = vadd.f32 %v557_v23, %v426_v40  ;;  %v1267_v25 = vpop.f32.mrb[14].mxu1  ;;  %1292 = vmatprep.mubr.bf16.mxu0 %v592_v20 }
 0x1e8   : > { %v569_v26 = vadd.f32 %v1267_v25, %v426_v40  ;;  %v560_v27 = vpop.f32.mrb[15].mxu1  ;;  %1293 = vmatmul.mubr.bf16.gmra.mrb[24].mxu0 %v593_v19  ;;  %v586_v29 = vmax.f32 %v566_v22, 0.0 }
 0x1e9   : > { %v561_v28 = vadd.f32 %v560_v27, %v426_v40  ;;  %v584_v31 = vmax.f32 %v558_v24, 0.0 }
 0x1ea   : > { %v587_v30 = vmax.f32 %v569_v26, 0.0 }
 0x1eb   : > { %v585_v32 = vmax.f32 %v561_v28, 0.0 }
 0x1ec   : > { %v595_v33 = vpack.c.bf16 %v587_v30, %v586_v29 }
 0x1ed   : > { %v594_v34 = vpack.c.bf16 %v585_v32, %v584_v31 }
 0x1ef   : > { %1296 = vmatprep.mubr.bf16.mxu0 %v594_v34 }
 0x1f0   : > { %1297 = vmatmul.mubr.bf16.gmra.mrb[28].mxu0 %v595_v33 }
 0x2ab   : > { %v1286_v37 = vpop.f32.mrb[16].mxu0 }
 0x2ac   : > { %v707_v38 = vadd.f32 %v1286_v37, %v615_v36  ;;  %v698_v39 = vpop.f32.mrb[17].mxu0 }
 0x2ad   : > { %v699_v42 = vadd.f32 %v698_v39, %v615_v36  ;;  %v1287_v44 = vpop.f32.mrb[18].mxu0 }
 0x2ae   : > { %765 = vmax.xlane.f32.xlu1 %v707_v38  ;;  %v701_v45 = vpop.f32.mrb[19].mxu0  ;;  %v710_v40 = vadd.f32 %v1287_v44, %v615_v36 }
 0x2af   : > { %761 = vmax.xlane.f32.xlu0 %v699_v42  ;;  %v702_v46 = vadd.f32 %v701_v45, %v615_v36 }
 0x2b2   : > { %767 = vmax.xlane.f32.xlu1 %v710_v40 }
 0x2b3   : > { %v1290_v47 = vpop.f32.mrb[20].mxu0  ;;  %763 = vmax.xlane.f32.xlu0 %v702_v46 }
 0x2b4   : > { %v723_v48 = vadd.f32 %v1290_v47, %v615_v36  ;;  %v714_v49 = vpop.f32.mrb[21].mxu0 }
 0x2b5   : > { %v1291_v50 = vpop.f32.mrb[22].mxu0  ;;  %v715_v43 = vadd.f32 %v714_v49, %v615_v36 }
 0x2b6   : > { %v726_v51 = vadd.f32 %v1291_v50, %v615_v36  ;;  %v717_v41 = vpop.f32.mrb[23].mxu0 }
 0x2b7   : > { %773 = vmax.xlane.f32.xlu0 %v723_v48  ;;  %v718_v52 = vadd.f32 %v717_v41, %v615_v36 }
 0x2b8   : > { %775 = vmax.xlane.f32.xlu1 %v726_v51 }
 0x2bb   : > { %v1294_v53 = vpop.f32.mrb[24].mxu0  ;;  %769 = vmax.xlane.f32.xlu0 %v715_v43 }
 0x2bc   : > { %v1661_v54 = vadd.f32 %v1294_v53, %v615_v36  ;;  %v730_v55 = vpop.f32.mrb[25].mxu0  ;;  %771 = vmax.xlane.f32.xlu1 %v718_v52 }
 0x2bd   : > { %v1295_v56 = vpop.f32.mrb[26].mxu0  ;;  %v1667_v59 = vadd.f32 %v730_v55, %v615_v36 }
 0x2be   : > { %v1663_v57 = vadd.f32 %v1295_v56, %v615_v36  ;;  %v733_v58 = vpop.f32.mrb[27].mxu0 }
 0x2bf   : > { %781 = vmax.xlane.f32.xlu0 %v1661_v54  ;;  %v1669_v60 = vadd.f32 %v733_v58, %v615_v36 }
 0x2c0   : > { %783 = vmax.xlane.f32.xlu1 %v1663_v57 }
 0x2c3   : > { %v1298_v61 = vpop.f32.mrb[28].mxu0  ;;  %777 = vmax.xlane.f32.xlu0 %v1667_v59 }
 0x2c4   : > { %v746_v62 = vpop.f32.mrb[29].mxu0  ;;  %779 = vmax.xlane.f32.xlu1 %v1669_v60  ;;  %v1678_v3 = vadd.f32 %v1298_v61, %v615_v36 }
 0x2c5   : > { %v1673_v63 = vadd.f32 %v746_v62, %v615_v36  ;;  %v1299_v0 = vpop.f32.mrb[30].mxu0 }
 0x2c6   : > { %v749_v1 = vpop.f32.mrb[31].mxu0  ;;  %v1681_v4 = vadd.f32 %v1299_v0, %v615_v36 }
 0x2c7   : > { %v1675_v2 = vadd.f32 %v749_v1, %v615_v36  ;;  %785 = vmax.xlane.f32.xlu0 %v1673_v63 }
 0x2c9   : > { %787 = vmax.xlane.f32.xlu1 %v1675_v2 }
 0x2cb   : > { %789 = vmax.xlane.f32.xlu0 %v1678_v3 }
 0x2cd   : > { %791 = vmax.xlane.f32.xlu1 %v1681_v4 }
 0x33b   : > { %v766_v5 = vpop.xlane.xlu1 %765 }
 0x33c   : > { %v795_v6 = vsub.f32 %v707_v38, %v766_v5  ;;  %v762_v7 = vpop.xlane.xlu0 %761 }
 0x33d   : > { %v793_v8 = vsub.f32 %v699_v42, %v762_v7 }
 0x33e   : > { %v813_v9 = vmul.f32 1.442695, %v795_v6 }
 0x33f   : > { %v809_v10 = vmul.f32 1.442695, %v793_v8  ;;  %v768_v11 = vpop.xlane.xlu1 %767 }
 0x340   : > { %1358 = vpow2.f32 %v813_v9  ;;  %v796_v12 = vsub.f32 %v710_v40, %v768_v11  ;;  %v764_v13 = vpop.xlane.xlu0 %763 }
 0x341   : > { %v794_v14 = vsub.f32 %v702_v46, %v764_v13  ;;  %1360 = vpow2.f32 %v809_v10 }
 0x342   : > { %v815_v15 = vmul.f32 1.442695, %v796_v12 }
 0x343   : > { %v811_v16 = vmul.f32 1.442695, %v794_v14 }
 0x344   : > { %1362 = vpow2.f32 %v815_v15  ;;  %v774_v17 = vpop.xlane.xlu0 %773 }
 0x345   : > { %v799_v18 = vsub.f32 %v723_v48, %v774_v17  ;;  %v776_v19 = vpop.xlane.xlu1 %775  ;;  %1364 = vpow2.f32 %v811_v16 }
 0x346   : > { %v800_v20 = vsub.f32 %v726_v51, %v776_v19 }
 0x347   : > { %v821_v21 = vmul.f32 1.442695, %v799_v18 }
 0x348   : > { %v823_v22 = vmul.f32 1.442695, %v800_v20  ;;  %v770_v23 = vpop.xlane.xlu0 %769 }
 0x349   : > { %1366 = vpow2.f32 %v821_v21  ;;  %v797_v24 = vsub.f32 %v715_v43, %v770_v23  ;;  %v772_v25 = vpop.xlane.xlu1 %771 }
 0x34a   : > { %v1685_v26 = vpop.eup %1358  ;;  %v798_v27 = vsub.f32 %v718_v52, %v772_v25  ;;  %1368 = vpow2.f32 %v823_v22 }
 0x34b   : > { %v817_v28 = vmul.f32 1.442695, %v797_v24  ;;  %845 = vadd.xlane.f32.xlu0 %v1685_v26  ;;  %v1688_v31 = vpop.eup %1360 }
 0x34c   : > { %v819_v29 = vmul.f32 1.442695, %v798_v27  ;;  %v782_v30 = vpop.xlane.xlu0 %781 }
 0x34d   : > { %1370 = vpow2.f32 %v817_v28  ;;  %v803_v32 = vsub.f32 %v1661_v54, %v782_v30  ;;  %v784_v33 = vpop.xlane.xlu1 %783 }
 0x34e   : > { %v1691_v34 = vpop.eup %1362  ;;  %v804_v35 = vsub.f32 %v1663_v57, %v784_v33  ;;  %1372 = vpow2.f32 %v819_v29 }
 0x34f   : > { %v829_v36 = vmul.f32 1.442695, %v803_v32  ;;  %847 = vadd.xlane.f32.xlu1 %v1691_v34  ;;  %841 = vadd.xlane.f32.xlu0 %v1688_v31  ;;  %v1697_v44 = vpop.eup %1364 }
 0x350   : > { %v831_v37 = vmul.f32 1.442695, %v804_v35  ;;  %v778_v38 = vpop.xlane.xlu0 %777 }
 0x351   : > { %1374 = vpow2.f32 %v829_v36  ;;  %v801_v39 = vsub.f32 %v1667_v59, %v778_v38  ;;  %v780_v42 = vpop.xlane.xlu1 %779 }
 0x352   : > { %v802_v45 = vsub.f32 %v1669_v60, %v780_v42  ;;  %1376 = vpow2.f32 %v831_v37 }
 0x353   : > { %v1700_v40 = vpop.eup %1366  ;;  %v825_v46 = vmul.f32 1.442695, %v801_v39  ;;  %843 = vadd.xlane.f32.xlu1 %v1697_v44 }
 0x354   : > { %v827_v47 = vmul.f32 1.442695, %v802_v45  ;;  %853 = vadd.xlane.f32.xlu0 %v1700_v40  ;;  %v786_v48 = vpop.xlane.xlu0 %785  ;;  %v1705_v50 = vpop.eup %1368 }
 0x355   : > { %1378 = vpow2.f32 %v825_v46  ;;  %v805_v49 = vsub.f32 %v1673_v63, %v786_v48 }
 0x356   : > { %v788_v51 = vpop.xlane.xlu1 %787  ;;  %1380 = vpow2.f32 %v827_v47 }
 0x357   : > { %v1707_v41 = vpop.eup %1370  ;;  %v833_v43 = vmul.f32 1.442695, %v805_v49  ;;  %v806_v52 = vsub.f32 %v1675_v2, %v788_v51  ;;  %855 = vadd.xlane.f32.xlu1 %v1705_v50 }
 0x358   : > { %849 = vadd.xlane.f32.xlu0 %v1707_v41  ;;  %v790_v53 = vpop.xlane.xlu0 %789  ;;  %v1713_v56 = vpop.eup %1372 }
 0x359   : > { %1382 = vpow2.f32 %v833_v43  ;;  %v835_v54 = vmul.f32 1.442695, %v806_v52  ;;  %v807_v55 = vsub.f32 %v1678_v3, %v790_v53 }
 0x35a   : > { %v792_v57 = vpop.xlane.xlu1 %791 }
 0x35b   : > { %v1715_v58 = vpop.eup %1374  ;;  %1384 = vpow2.f32 %v835_v54  ;;  %v837_v59 = vmul.f32 1.442695, %v807_v55  ;;  %v808_v60 = vsub.f32 %v1681_v4, %v792_v57  ;;  %851 = vadd.xlane.f32.xlu1 %v1713_v56 }
 0x35c   : > { %861 = vadd.xlane.f32.xlu0 %v1715_v58  ;;  %v1720_v62 = vpop.eup %1376 }
 0x35d   : > { %1386 = vpow2.f32 %v837_v59  ;;  %v839_v61 = vmul.f32 1.442695, %v808_v60 }
 0x35f   : > { %v1722_v63 = vpop.eup %1378  ;;  %1388 = vpow2.f32 %v839_v61  ;;  %863 = vadd.xlane.f32.xlu1 %v1720_v62 }
 0x360   : > { %857 = vadd.xlane.f32.xlu0 %v1722_v63  ;;  %v1726_v0 = vpop.eup %1380 }
 0x363   : > { %v1728_v1 = vpop.eup %1382  ;;  %859 = vadd.xlane.f32.xlu1 %v1726_v0 }
 0x364   : > { %865 = vadd.xlane.f32.xlu0 %v1728_v1 }
 0x365   : > { %v1732_v2 = vpop.eup %1384 }
 0x367   : > { %v1734_v3 = vpop.eup %1386  ;;  %867 = vadd.xlane.f32.xlu1 %v1732_v2 }
 0x368   : > { %869 = vadd.xlane.f32.xlu0 %v1734_v3 }
 0x369   : > { %v1738_v4 = vpop.eup %1388 }
 0x36b   : > { %871 = vadd.xlane.f32.xlu1 %v1738_v4 }
 0x3d8   : > { %v846_v5 = vpop.xlane.xlu0 %845 }
 0x3d9   : > { %1390 = vrcp.f32 %v846_v5 }
 0x3dc   : > { %v848_v6 = vpop.xlane.xlu1 %847  ;;  %v842_v7 = vpop.xlane.xlu0 %841 }
 0x3dd   : > { %1392 = vrcp.f32 %v848_v6 }
 0x3de   : > { %1394 = vrcp.f32 %v842_v7 }
 0x3e0   : > { %v844_v8 = vpop.xlane.xlu1 %843 }
 0x3e1   : > { %1396 = vrcp.f32 %v844_v8  ;;  %v854_v9 = vpop.xlane.xlu0 %853 }
 0x3e2   : > { %1398 = vrcp.f32 %v854_v9 }
 0x3e3   : > { %v1391_v11 = vpop.eup %1390 }
 0x3e4   : > { %v856_v10 = vpop.xlane.xlu1 %855  ;;  %v891_v14 = vmul.f32 %v1391_v11, %v1685_v26 }
 0x3e5   : > { %1400 = vrcp.f32 %v856_v10  ;;  %v850_v12 = vpop.xlane.xlu0 %849 }
 0x3e6   : > { %1402 = vrcp.f32 %v850_v12 }
 0x3e7   : > { %v1393_v13 = vpop.eup %1392 }
 0x3e8   : > { %v892_v15 = vmul.f32 %v1393_v13, %v1691_v34  ;;  %v852_v16 = vpop.xlane.xlu1 %851  ;;  %v1395_v17 = vpop.eup %1394 }
 0x3e9   : > { %1404 = vrcp.f32 %v852_v16  ;;  %v862_v18 = vpop.xlane.xlu0 %861  ;;  %v889_v21 = vmul.f32 %v1395_v17, %v1688_v31 }
 0x3ea   : > { %v1138_v19 = vpack.c.bf16 %v892_v15, %v891_v14  ;;  %1406 = vrcp.f32 %v862_v18 }
 0x3eb   : > { %v1397_v20 = vpop.eup %1396 }
 0x3ec   : > { %1170 = vst [vmem:[%s1746_s16 + $0x8] sm:$0xff] %v1138_v19   ;;  %v890_v22 = vmul.f32 %v1397_v20, %v1697_v44  ;;  %v864_v23 = vpop.xlane.xlu1 %863  ;;  %v1399_v24 = vpop.eup %1398 }
 0x3ed   : > { %1408 = vrcp.f32 %v864_v23  ;;  %v858_v25 = vpop.xlane.xlu0 %857  ;;  %v895_v28 = vmul.f32 %v1399_v24, %v1700_v40 }
 0x3ee   : > { %v1133_v26 = vpack.c.bf16 %v890_v22, %v889_v21  ;;  %1410 = vrcp.f32 %v858_v25 }
 0x3ef   : > { %v1401_v27 = vpop.eup %1400 }
 0x3f0   : > { %1134 = vst [vmem:[%s1746_s16] sm:$0xff] %v1133_v26   ;;  %v896_v29 = vmul.f32 %v1401_v27, %v1705_v50  ;;  %v860_v30 = vpop.xlane.xlu1 %859  ;;  %v1403_v32 = vpop.eup %1402 }
 0x3f1   : > { %1412 = vrcp.f32 %v860_v30  ;;  %v866_v31 = vpop.xlane.xlu0 %865  ;;  %v893_v35 = vmul.f32 %v1403_v32, %v1707_v41 }
 0x3f2   : > { %v1148_v33 = vpack.c.bf16 %v896_v29, %v895_v28  ;;  %1414 = vrcp.f32 %v866_v31 }
 0x3f3   : > { %v1405_v34 = vpop.eup %1404 }
 0x3f4   : > { %1172 = vst [vmem:[%s1746_s16 + $0x18] sm:$0xff] %v1148_v33   ;;  %v894_v36 = vmul.f32 %v1405_v34, %v1713_v56  ;;  %v868_v37 = vpop.xlane.xlu1 %867  ;;  %v1407_v38 = vpop.eup %1406 }
 0x3f5   : > { %1416 = vrcp.f32 %v868_v37  ;;  %v870_v39 = vpop.xlane.xlu0 %869  ;;  %v899_v45 = vmul.f32 %v1407_v38, %v1715_v58 }
 0x3f6   : > { %v1143_v42 = vpack.c.bf16 %v894_v36, %v893_v35  ;;  %1418 = vrcp.f32 %v870_v39 }
 0x3f7   : > { %v1409_v44 = vpop.eup %1408 }
 0x3f8   : > { %1171 = vst [vmem:[%s1746_s16 + $0x10] sm:$0xff] %v1143_v42   ;;  %v900_v40 = vmul.f32 %v1409_v44, %v1720_v62  ;;  %v872_v46 = vpop.xlane.xlu1 %871  ;;  %v1411_v47 = vpop.eup %1410 }
 0x3f9   : > { %1420 = vrcp.f32 %v872_v46  ;;  %v897_v50 = vmul.f32 %v1411_v47, %v1722_v63 }
 0x3fa   : > { %v1158_v48 = vpack.c.bf16 %v900_v40, %v899_v45 }
 0x3fb   : > { %v1413_v49 = vpop.eup %1412 }
 0x3fc   : > { %1174 = vst [vmem:[%s1746_s16 + $0x28] sm:$0xff] %v1158_v48   ;;  %v898_v51 = vmul.f32 %v1413_v49, %v1726_v0  ;;  %v1415_v41 = vpop.eup %1414 }
 0x3fd   : > { %v901_v53 = vmul.f32 %v1415_v41, %v1728_v1 }
 0x3fe   : > { %v1153_v43 = vpack.c.bf16 %v898_v51, %v897_v50 }
 0x3ff   : > { %v1417_v52 = vpop.eup %1416 }
 0x400   : > { %1173 = vst [vmem:[%s1746_s16 + $0x20] sm:$0xff] %v1153_v43   ;;  %v902_v54 = vmul.f32 %v1417_v52, %v1732_v2  ;;  %v1419_v55 = vpop.eup %1418 }
 0x401   : > { %v903_v58 = vmul.f32 %v1419_v55, %v1734_v3 }
 0x402   : > { %v1163_v56 = vpack.c.bf16 %v902_v54, %v901_v53 }
 0x403   : > { %v1421_v57 = vpop.eup %1420 }
 0x404   : > { %1175 = vst [vmem:[%s1746_s16 + $0x30] sm:$0xff] %v1163_v56   ;;  %v904_v59 = vmul.f32 %v1421_v57, %v1738_v4 }
 0x406   : > { %v1168_v60 = vpack.c.bf16 %v904_v59, %v903_v58 }
 0x408   : > { %1176 = vst [vmem:[%s1746_s16 + $0x38] sm:$0xff] %v1168_v60  }
 0x409   : > { %1435 = shalt.err (!%p1432_p3)
}
 0x40a   : > { %s1436_s10 = scalar_lea.hbm %s1774_s30, 1024  ;;  %s1440_s13 = scalar_lea.hbm %s1827_s5, 2048 }
 0x40b   : > { %p1437_p4 = scmp.ne.s32.totalorder %s1774_s30, %s1436_s10  ;;  %p1441_p9 = scmp.lt.u32.totalorder %s1774_s30, %s1827_s5 }
 0x40c   : > { %p1442_p10 = scmp.lt.u32.totalorder %s1440_s13, %s1436_s10  ;;  %p1444_p12 = scmp.lt.u32.totalorder %s1436_s10, %s1774_s30 }
 0x40d   : > { %p1438_p7 = pnand %p1437_p4, %p1557_p5 }
 0x40e   : > { %p1443_p11 = por %p1442_p10, %p1441_p9 }
 0x40f   : > { %p1439_p8 = pneg %p1438_p7 }
 0x410   : > { %p1445_p13 = por %p1444_p12, %p1443_p11 }
 0x412   : > { %p1446_p0 = pnand %p1445_p13, %p1439_p8 }
 0x414   : > { %1449 = shalt.err (!%p1446_p0)
}
 0x415   : > { %s1487_s16 = smov 64   ;;  %s1488_s17 = smov 4  }
 0x416   : > { %1301 = dma.vmem_to_hbm [thread:$0]  (%p1557_p5), %s1776_s23, 1024, %s1774_s30, %s1781_s22, %s1487_s16, %s1487_s16, %s1488_s17  }
 0x417 PF: > { %p1307_p1 = scmp.ge.s32.totalorder %s1484_s21, 2  ;;  %s1014_s25 = sand.u32 1, %s1472_s18  }
 0x418   : > { %s1015_s26 = scalar_lea.sflag [#allocation3], %s1014_s25 }
 0x419   : > { %p1304_p2 = pnand %p1307_p1, %p1561_p6 }
 0x41b   : > { %1467 = dma.done.wait (!%p1304_p2), %s1015_s26, 1024  }
 0x41c   : > { %1469 = vsyncadd (!%p1304_p2), %s1015_s26, 4294966272  ;;  %p15_p3 = scmp.ge.s32.totalorder %s1544_s24, 4   ;;  %s1830_s18 = smov %s1476_s19 }
 0x41d   : > { %s1831_s19 = smov %s1480_s20  ;;  %s1832_s20 = smov %s1555_s27 }
 0x41e   : > { %s1833_s21 = smov %s1544_s24  ;;  %17 = sbr.rel (!%p15_p3) target bundleno = 3 (0x3), region = 75 }
 0x425   :  { %1020 = vsyncpa [#allocation3], 1 }
 0x426   :  { %1022 = vsyncpa [#allocation3 + $0x1], 1 }

</bundles_post_ra>
